<compile_context>
chip_gen: v6e
topology: v6e:2x2x1
jax: 0.10.0
libtpu: 0.0.40
codegen_flags: <defaults>
</compile_context>

<pallas_src>
import functools

import jax
import jax.numpy as jnp
from jax import lax
from jax.experimental import pallas as pl
from jax.experimental.pallas import tpu as pltpu

_NEG_BIG = -9.0e15  # same non-edge constant as the torch module


def _round_up(x, m):
    return ((x + m - 1) // m) * m


# ---------------------------------------------------------------------------
# Stage 1: h_o = o_input @ W_o   (large-row-tile Pallas matmul, one/few steps)
# ---------------------------------------------------------------------------
def _proj_kernel(x_ref, w_ref, o_ref, *, denom_col):
    res = jnp.dot(x_ref[...], w_ref[...], preferred_element_type=jnp.float32)
    if denom_col is not None:
        # Put 1.0 in the first padding column of h_o so the attention matmul also
        # produces the softmax denominator (sum_j p[i,j]) in that column for free.
        col = lax.broadcasted_iota(jnp.int32, res.shape, 1)
        res = jnp.where(col == denom_col, 1.0, res)
    o_ref[...] = res.astype(o_ref.dtype)


def _project(x, w, *, block_rows, denom_col):
    n, k = x.shape
    f = w.shape[1]
    return pl.pallas_call(
        functools.partial(_proj_kernel, denom_col=denom_col),
        out_shape=jax.ShapeDtypeStruct((n, f), x.dtype),
        grid_spec=pltpu.PrefetchScalarGridSpec(
            num_scalar_prefetch=0,
            grid=(n // block_rows,),
            in_specs=[
                pl.BlockSpec((block_rows, k), lambda i: (i, 0)),
                pl.BlockSpec((k, f), lambda i: (0, 0)),   # constant index: no re-DMA
            ],
            out_specs=pl.BlockSpec((block_rows, f), lambda i: (i, 0)),
        ),
        compiler_params=pltpu.CompilerParams(dimension_semantics=("parallel",)),
    )(x, w)


# ---------------------------------------------------------------------------
# Stage 2: masked softmax attention + aggregation (flash-style online softmax)
# ---------------------------------------------------------------------------
def _attn_kernel(et_ref, eo_ref, bias_ref, adj_ref, ho_ref, out_ref,
                 m_sc, l_sc, acc_sc, *,
                 alpha, concat, denom_col, ho_resident, approx_recip):
    ko = pl.program_id(1)
    blk_no = adj_ref.shape[1]

    @pl.when(ko == 0)
    def _init():
        m_sc[...] = jnp.full(m_sc.shape, -jnp.inf, dtype=jnp.float32)
        acc_sc[...] = jnp.zeros_like(acc_sc)
        if denom_col is None:
            l_sc[...] = jnp.zeros_like(l_sc)

    # Logits tile: pure VPU broadcast add (no transpose, no mat-vec).
    # LeakyReLU via max (valid for 0 <= alpha <= 1), then ONE select where the
    # precomputed bias row carries -9e15 (real non-edge) / -inf (padding column).
    e = et_ref[...] + eo_ref[...]                 # (bnt,1)+(1,bno) -> (bnt,bno)
    e = jnp.maximum(e, alpha * e)                 # LeakyReLU(alpha)
    e = jnp.where(adj_ref[...] > 0, e, bias_ref[...])

    m_prev = m_sc[...]
    m_new = jnp.maximum(m_prev, jnp.max(e, axis=1, keepdims=True))
    corr = jnp.exp(m_prev - m_new)
    p = jnp.exp(e - m_new)                        # f32 softmax math

    if ho_resident:
        j0 = pl.multiple_of(ko * blk_no, blk_no)
        ho = ho_ref[pl.ds(j0, blk_no), :]         # resident h_o: slice, no re-DMA
    else:
        ho = ho_ref[...]                          # streamed h_o tile

    acc_sc[...] = corr * acc_sc[...] + jnp.dot(
        p.astype(ho.dtype), ho, preferred_element_type=jnp.float32)
    if denom_col is None:                         # fallback when no spare h_o column
        l_sc[...] = corr * l_sc[...] + jnp.sum(p, axis=1, keepdims=True)
    m_sc[...] = m_new

    @pl.when(ko == pl.num_programs(1) - 1)
    def _finalize():
        acc = acc_sc[...]
        if denom_col is None:
            l = l_sc[...]
        else:
            l = acc[:, denom_col:denom_col + 1]   # denominator came out of the MXU
        h_prime = acc * pl.reciprocal(l, approx=approx_recip)
        if concat:
            # ELU(alpha=1); clamp the exp argument so the unselected branch never infs.
            h_prime = jnp.where(h_prime > 0, h_prime,
                                jnp.exp(jnp.minimum(h_prime, 0.0)) - 1.0)
        out_ref[...] = h_prime.astype(out_ref.dtype)


def _attention_vmem_bytes(block_nt, block_no, F_pad, N_o_pad, itemsize,
                          out_itemsize, ho_resident):
    """Rough VMEM budget: double-buffered tiles + scratch + f32 temporaries."""
    ho_rows = N_o_pad if ho_resident else block_no
    b = 0
    b += 2 * block_nt * 128 * 4                 # e_t column (lane-padded), 2 buffers
    b += 2 * 2 * 8 * block_no * 4               # e_o + bias rows (sublane-padded), 2 bufs each
    b += 2 * block_nt * block_no                # int8 adj, 2 buffers
    b += 2 * ho_rows * F_pad * itemsize         # h_o (resident counted at 2 buffers too)
    b += 2 * block_nt * F_pad * out_itemsize    # output tile, 2 buffers
    b += 2 * block_nt * 128 * 4                 # m, l scratch (lane-padded)
    b += block_nt * F_pad * 4                   # acc scratch
    b += 4 * block_nt * block_no * 4            # e/p f32 temporaries headroom
    return b


def prepare_adj_mask(adj):
    """adj -> int8 edge mask. Call once and reuse across layers/steps to hoist the
    f32->int8 conversion out of every node_attention_layer call."""
    adj = jnp.asarray(adj)
    if adj.dtype == jnp.int8:
        return adj
    return (adj > 0).astype(jnp.int8)


# ---------------------------------------------------------------------------
# Wrapper
# ---------------------------------------------------------------------------
def node_attention_layer(t_input, o_input, adj, W_t, W_o, a, *,
                         alpha=0.2, concat=True,
                         block_nt=256, block_no=512,
                         matmul_dtype=jnp.bfloat16,
                         out_dtype=jnp.float32,
                         approx_reciprocal=None,
                         ho_resident_limit_bytes=12 * 1024 * 1024):
    """Pallas forward of NodeAttentionLayer. `a` has shape (2*out_features, 1).

    block_nt/block_no default to 256x512 (clamped to the padded problem size); on v7x
    prefer block_nt such that N_t_pad/block_nt >= 2 so both TensorCores are used.
    """
    t_input = jnp.asarray(t_input, jnp.float32)
    o_input = jnp.asarray(o_input, jnp.float32)
    W_t = jnp.asarray(W_t, jnp.float32)
    W_o = jnp.asarray(W_o, jnp.float32)
    a = jnp.asarray(a, jnp.float32)

    N_t = t_input.shape[0]
    N_o, K_o = o_input.shape
    F = W_t.shape[1]
    a_t, a_o = a[:F, :], a[F:, :]

    # Clamp tiles to the padded problem size while keeping the (8,128) layout contract.
    block_nt = max(8, min(block_nt, _round_up(N_t, 8)))
    block_no = max(128, min(block_no, _round_up(N_o, 128)))

    F_pad = _round_up(F, 128)
    N_t_pad = _round_up(N_t, block_nt)
    N_o_pad = _round_up(N_o, block_no)

    # Fold the attention vector into the projections (tiny wrapper-side mat-vecs):
    #   e_t = t_input @ (W_t @ a_t),  e_o = o_input @ (W_o @ a_o)  -> lane-dense row.
    e_t_col = (t_input @ (W_t @ a_t)).astype(jnp.float32)                  # (N_t, 1)
    e_o_row = (o_input @ (W_o @ a_o)).reshape(1, N_o).astype(jnp.float32)  # (1, N_o)

    # Softmax-denominator-in-MXU trick needs one spare (padding) column in h_o.
    denom_col = F if F_pad > F else None

    itemsize = jnp.dtype(matmul_dtype).itemsize
    out_itemsize = jnp.dtype(out_dtype).itemsize

    # h_o projected once (Pallas), bf16 MXU inputs / f32 accumulation.
    o_pad = jnp.zeros((N_o_pad, K_o), matmul_dtype).at[:N_o].set(
        o_input.astype(matmul_dtype))
    w_o_pad = jnp.zeros((K_o, F_pad), matmul_dtype).at[:, :F].set(
        W_o.astype(matmul_dtype))
    proj_rows = N_o_pad if N_o_pad <= 2048 else block_no
    h_o = _project(o_pad, w_o_pad, block_rows=proj_rows, denom_col=denom_col)

    # int8 adjacency mask (4x less DMA than f32). prepare_adj_mask lets callers hoist
    # the conversion if adj is reused across calls.
    adj_mask = prepare_adj_mask(adj)
    adj_i8 = jnp.zeros((N_t_pad, N_o_pad), jnp.int8).at[:N_t, :N_o].set(adj_mask)

    e_t_pad = jnp.zeros((N_t_pad, 1), jnp.float32).at[:N_t].set(e_t_col)
    e_o_pad = jnp.zeros((1, N_o_pad), jnp.float32).at[:, :N_o].set(e_o_row)
    # Per-column bias: -9e15 for real columns (torch non-edge value), -inf for padding
    # columns -> padding never contributes, and zero-edge rows fall back to the uniform
    # softmax over the TRUE N_o, exactly like torch.
    bias_row = jnp.full((1, N_o_pad), -jnp.inf, jnp.float32).at[:, :N_o].set(_NEG_BIG)

    ho_resident = (N_o_pad * F_pad * itemsize) <= ho_resident_limit_bytes
    if ho_resident:
        ho_spec = pl.BlockSpec((N_o_pad, F_pad), lambda i, j: (0, 0))   # DMA'd once
    else:
        ho_spec = pl.BlockSpec((block_no, F_pad), lambda i, j: (j, 0))  # streamed

    grid = (N_t_pad // block_nt, N_o_pad // block_no)
    if approx_reciprocal is None:
        approx_reciprocal = (jnp.dtype(matmul_dtype) == jnp.dtype(jnp.bfloat16))

    kernel = functools.partial(
        _attn_kernel, alpha=float(alpha), concat=bool(concat),
        denom_col=denom_col, ho_resident=ho_resident,
        approx_recip=bool(approx_reciprocal))

    vmem_bytes = _attention_vmem_bytes(block_nt, block_no, F_pad, N_o_pad,
                                       itemsize, out_itemsize, ho_resident)
    # Portable across v5e (16 MiB scoped default) .. v7x (64 MiB physical).
    vmem_limit = int(min(max(vmem_bytes + (16 << 20), 32 << 20), 64 << 20))

    ho_passes = 1 if ho_resident else grid[0]
    cost = pl.CostEstimate(
        flops=int(2 * N_t_pad * N_o_pad * F_pad + 8 * N_t_pad * N_o_pad),
        transcendentals=int(N_t_pad * N_o_pad),
        bytes_accessed=int(N_t_pad * N_o_pad                        # int8 adj
                           + ho_passes * N_o_pad * F_pad * itemsize  # h_o
                           + N_t_pad * F_pad * out_itemsize          # output
                           + (N_t_pad + 2 * N_o_pad) * 4))           # logit/bias rows

    out = pl.pallas_call(
        kernel,
        out_shape=jax.ShapeDtypeStruct((N_t_pad, F_pad), out_dtype),
        grid_spec=pltpu.PrefetchScalarGridSpec(
            num_scalar_prefetch=0,
            grid=grid,
            in_specs=[
                pl.BlockSpec((block_nt, 1), lambda i, j: (i, 0)),         # e_t column
                pl.BlockSpec((1, block_no), lambda i, j: (0, j)),         # e_o row
                pl.BlockSpec((1, block_no), lambda i, j: (0, j)),         # bias row
                pl.BlockSpec((block_nt, block_no), lambda i, j: (i, j)),  # adj (int8)
                ho_spec,                                                  # h_o
            ],
            out_specs=pl.BlockSpec((block_nt, F_pad), lambda i, j: (i, 0)),
            scratch_shapes=[
                pltpu.VMEM((block_nt, 1), jnp.float32),      # running max m
                pltpu.VMEM((block_nt, 1), jnp.float32),      # running sum l (fallback only)
                pltpu.VMEM((block_nt, F_pad), jnp.float32),  # running acc
            ],
        ),
        compiler_params=pltpu.CompilerParams(
            dimension_semantics=("parallel", "arbitrary"),
            vmem_limit_bytes=vmem_limit),
        cost_estimate=cost,
    )(e_t_pad, e_o_pad, bias_row, adj_i8, h_o)

    return out[:N_t, :F]


# ---------------------------------------------------------------------------
# Reference / test
# ---------------------------------------------------------------------------
def _xavier_uniform(key, shape, gain):
    fan_in, fan_out = shape[0], shape[1]
    bound = gain * jnp.sqrt(6.0 / (fan_in + fan_out))
    return jax.random.uniform(key, shape, jnp.float32, -bound, bound)


def _reference(t_input, o_input, adj, W_t, W_o, a, *, alpha=0.2, concat=True):
    """Pure-JAX f32 reference mirroring the PyTorch forward (eval mode)."""
    h_t = t_input @ W_t
    h_o = o_input @ W_o
    F_ = W_t.shape[1]
    e = h_t @ a[:F_] + (h_o @ a[F_:]).T
    e = jnp.where(e > 0, e, alpha * e)
    masked = jnp.where(adj > 0, e, _NEG_BIG)
    attn = jax.nn.softmax(masked, axis=1)
    h_prime = attn @ h_o
    return jax.nn.elu(h_prime) if concat else h_prime


if __name__ == "__main__":
    key = jax.random.PRNGKey(0)
    k1, k2, k3, k4, k5, k6 = jax.random.split(key, 6)

    # small shapes consistent with the module
    N_t, N_o = 8, 16
    t_in_features, o_in_features, out_features = 32, 24, 32
    alpha = 0.2
    gain = 1.414

    t_input = jax.random.normal(k1, (N_t, t_in_features), jnp.float32)
    o_input = jax.random.normal(k2, (N_o, o_in_features), jnp.float32)
    adj = (jax.random.uniform(k3, (N_t, N_o)) > 0.5).astype(jnp.float32)
    adj = adj.at[0, :].set(0.0)  # zero-edge row: exercises the uniform-softmax fallback

    W_t = _xavier_uniform(k4, (t_in_features, out_features), gain)
    W_o = _xavier_uniform(k5, (o_in_features, out_features), gain)
    a = _xavier_uniform(k6, (2 * out_features, 1), gain)

    ref = _reference(t_input, o_input, adj, W_t, W_o, a, alpha=alpha, concat=True)

    # f32 path, resident h_o: tight check of the tiled / online-softmax algorithm.
    out_f32 = node_attention_layer(t_input, o_input, adj, W_t, W_o, a,
                                   alpha=alpha, concat=True,
                                   matmul_dtype=jnp.float32)
    out_f32 = jax.block_until_ready(out_f32)
    assert out_f32.shape == (N_t, out_features)
    assert jnp.allclose(out_f32, ref, atol=1e-3, rtol=1e-3), "f32 mismatch vs reference"

    # Force the streamed-h_o code path (ho_resident_limit_bytes=0) and re-check.
    out_stream = node_attention_layer(t_input, o_input, adj, W_t, W_o, a,
                                      alpha=alpha, concat=True,
                                      matmul_dtype=jnp.float32,
                                      ho_resident_limit_bytes=0)
    out_stream = jax.block_until_ready(out_stream)
    assert jnp.allclose(out_stream, ref, atol=1e-3, rtol=1e-3), "streamed-h_o mismatch"

    # Multi-tile grid (several i and j tiles) to exercise the online-softmax rescales
    # and padding columns; still a small problem.
    k7, k8, k9, k10, k11, k12 = jax.random.split(jax.random.PRNGKey(1), 6)
    N_t2, N_o2, ti2, oi2, F2 = 96, 200, 20, 12, 16
    t2 = jax.random.normal(k7, (N_t2, ti2), jnp.float32)
    o2 = jax.random.normal(k8, (N_o2, oi2), jnp.float32)
    adj2 = (jax.random.uniform(k9, (N_t2, N_o2)) > 0.7).astype(jnp.float32)
    W_t2 = _xavier_uniform(k10, (ti2, F2), gain)
    W_o2 = _xavier_uniform(k11, (oi2, F2), gain)
    a2 = _xavier_uniform(k12, (2 * F2, 1), gain)
    ref2 = _reference(t2, o2, adj2, W_t2, W_o2, a2, alpha=alpha, concat=True)
    out2 = node_attention_layer(t2, o2, adj2, W_t2, W_o2, a2,
                                alpha=alpha, concat=True,
                                block_nt=32, block_no=128,
                                matmul_dtype=jnp.float32)
    out2 = jax.block_until_ready(out2)
    assert out2.shape == (N_t2, F2)
    assert jnp.allclose(out2, ref2, atol=1e-3, rtol=1e-3), "multi-tile mismatch"

    # bf16 MXU path (performance-default config): looser tolerance for bf16 rounding.
    out_bf16 = node_attention_layer(t_input, o_input, adj, W_t, W_o, a,
                                    alpha=alpha, concat=True,
                                    matmul_dtype=jnp.bfloat16)
    out_bf16 = jax.block_until_ready(out_bf16)
    assert out_bf16.shape == (N_t, out_features)
    assert jnp.allclose(out_bf16, ref, atol=5e-2, rtol=5e-2), "bf16 mismatch vs reference"

    print("KERNEL_OK")
</pallas_src>

<mosaic_0001>
module attributes {stable_mosaic.version = 11 : i64} {
  func.func @_proj_kernel(%arg0: i32, %arg1: memref<128x24xf32, #tpu.memory_space<vmem>>, %arg2: memref<24x128xf32, #tpu.memory_space<vmem>>, %arg3: memref<128x128xf32, #tpu.memory_space<vmem>>) attributes {dimension_semantics = [#tpu.dimension_semantics<parallel>], iteration_bounds = array<i64: 1>, scalar_prefetch = 0 : i64, scratch_operands = 0 : i64, tpu.core_type = #tpu.core_type<tc>, window_params = [{transform_indices = @transform_0, window_bounds = array<i64: 128, 24>}, {pipeline_mode = #tpu.pipeline_mode<synchronous>, transform_indices = @transform_1, window_bounds = array<i64: 24, 128>}, {transform_indices = @transform_2, window_bounds = array<i64: 128, 128>}]} {
    %c0 = arith.constant 0 : index
    %c0_0 = arith.constant 0 : index
    %0 = vector.load %arg1[%c0, %c0_0] : memref<128x24xf32, #tpu.memory_space<vmem>>, vector<128x24xf32>
    %c0_1 = arith.constant 0 : index
    %c0_2 = arith.constant 0 : index
    %1 = vector.load %arg2[%c0_1, %c0_2] : memref<24x128xf32, #tpu.memory_space<vmem>>, vector<24x128xf32>
    %cst = arith.constant dense<0.000000e+00> : vector<128x128xf32>
    %2 = tpu.matmul %0, %1, %cst {dimension_numbers = #tpu.dot_dimension_numbers<[1], [0], [0], [1], [0, 0, 1, 1], [], []>} : vector<128x24xf32>, vector<24x128xf32>, vector<128x128xf32> -> vector<128x128xf32>
    %3 = tpu.iota {dimensions = array<i32: 1>} : vector<128x128xi32>
    %c32_i32 = arith.constant 32 : i32
    %4 = vector.broadcast %c32_i32 : i32 to vector<128x128xi32>
    %5 = arith.cmpi eq, %3, %4 : vector<128x128xi32>
    %cst_3 = arith.constant 1.000000e+00 : f32
    %6 = vector.broadcast %cst_3 : f32 to vector<128x128xf32>
    %7 = arith.select %5, %6, %2 : vector<128x128xi1>, vector<128x128xf32>
    %c0_4 = arith.constant 0 : index
    %c0_5 = arith.constant 0 : index
    %8 = vector.load %arg3[%c0_4, %c0_5] : memref<128x128xf32, #tpu.memory_space<vmem>>, vector<128x128xf32>
    tpu.vector_store %arg3[%c0_4, %c0_5], %7 {strides = array<i32>} : memref<128x128xf32, #tpu.memory_space<vmem>>, vector<128x128xf32>,
    return
  }
  func.func @transform_0(%arg0: i32) -> (i32, i32) {
    %c0_i32 = arith.constant 0 : i32
    %c0_i32_0 = arith.constant 0 : i32
    return %arg0, %c0_i32 : i32, i32
  }
  func.func @transform_1(%arg0: i32) -> (i32, i32) {
    %c0_i32 = arith.constant 0 : i32
    %c0_i32_0 = arith.constant 0 : i32
    %c0_i32_1 = arith.constant 0 : i32
    return %c0_i32, %c0_i32_0 : i32, i32
  }
  func.func @transform_2(%arg0: i32) -> (i32, i32) {
    %c0_i32 = arith.constant 0 : i32
    %c0_i32_0 = arith.constant 0 : i32
    return %arg0, %c0_i32 : i32, i32
  }
}

</mosaic_0001>

<bundles_post_ra>
// kernel: tpu_custom_call.1
= control target key start
LH: loop header
LB: loop body
LE: loop exit
PB: predicated region body
PF: predicated region fallthrough
CT: control target
= control target key end

     0   :  { %vm31_vm0 = vcmask 195584   ;;  %s482_s0 = inlined_call_operand.vmem [shape: f32[128,24], index: 0, kind: input, shape index: {}]   ;;  %s483_s1 = inlined_call_operand.vmem [shape: f32[24,128], index: 1, kind: input, shape index: {}]   ;;  %s484_s2 = inlined_call_operand.hbm [shape: f32[128,128], index: 2, kind: output, shape index: {}]  }
   0x1   :  { %v30_v0 = vld [vmem:[%s483_s1 + $0x10] sm:$0xff]  ;;  %v29_v1 = vld [vmem:[%s483_s1 + $0x8] sm:$0xff]  ;;  %v28_v2 = vld [vmem:[%s483_s1] sm:$0xff] }
   0x2   :  { %311 = vmatprep.subr.mxu0 %v30_v0  ;;  %341 = vmatprep.subr.mxu1 %v30_v0  ;;  %v12_v3 = vld [vmem:[%s482_s0] sm:$0xff]  ;;  %v13_v5 = vld [vmem:[%s482_s0 + $0x8] sm:$0xff]  ;;  %v14_v7 = vld [vmem:[%s482_s0 + $0x10] sm:$0xff] }
   0x3   :  { %312 = vmatpush3.msra.mxu0 %v30_v0  ;;  %344 = vmatpush3.msra.mxu1 %v30_v0  ;;  %v20_v4 = vld [vmem:[%s482_s0 + $0x40] sm:$0xff]  ;;  %v21_v6 = vld [vmem:[%s482_s0 + $0x48] sm:$0xff]  ;;  %v22_v8 = vld [vmem:[%s482_s0 + $0x50] sm:$0xff] }
   0x4   :  { %313 = vmatprep.subr.mxu0 %v29_v1  ;;  %342 = vmatprep.subr.mxu1 %v29_v1 }
   0x5   :  { %314 = vmatpush3.msra.mxu0 %v29_v1  ;;  %345 = vmatpush3.msra.mxu1 %v29_v1 }
   0x6   :  { %315 = vmatprep.subr.mxu0 %v28_v2  ;;  %343 = vmatprep.subr.mxu1 %v28_v2 }
   0x7   :  { %316 = vmatpush3.msra.mxu0 %v28_v2  ;;  %346 = vmatpush3.msra.mxu1 %v28_v2 }
   0x8   :  { %7 = vsyncpa [#allocation3], 0  ;;  %317 = vmatprep.mubr.msk.f32.mxu0 %vm31_vm0, %v12_v3  ;;  %329 = vmatprep.mubr.msk.f32.mxu1 %vm31_vm0, %v20_v4  ;;  %v15_v9 = vld [vmem:[%s482_s0 + $0x18] sm:$0xff]  ;;  %v16_v11 = vld [vmem:[%s482_s0 + $0x20] sm:$0xff]  ;;  %v225_v19 = vlaneseq }
   0x9   :  { %318 = vmatmul.mubr.msk.f32.vlgmr.msra.gmra.mxu0 %vm31_vm0, %v13_v5  ;;  %330 = vmatmul.mubr.msk.f32.vlgmr.msra.gmra.mxu1 %vm31_vm0, %v21_v6  ;;  %v23_v10 = vld [vmem:[%s482_s0 + $0x58] sm:$0xff]  ;;  %v24_v12 = vld [vmem:[%s482_s0 + $0x60] sm:$0xff]  ;;  %v17_v13 = vld [vmem:[%s482_s0 + $0x28] sm:$0xff] }
   0xa   :  { %320 = vmatprep.mubr.msk.f32.mxu0 %vm31_vm0, %v14_v7  ;;  %332 = vmatprep.mubr.msk.f32.mxu1 %vm31_vm0, %v22_v8  ;;  %v25_v14 = vld [vmem:[%s482_s0 + $0x68] sm:$0xff]  ;;  %v18_v15 = vld [vmem:[%s482_s0 + $0x30] sm:$0xff]  ;;  %v19_v17 = vld [vmem:[%s482_s0 + $0x38] sm:$0xff]  ;;  %v226_v20 = vand.u32 127, %v225_v19 }
   0xb   :  { %v26_v16 = vld [vmem:[%s482_s0 + $0x70] sm:$0xff]  ;;  %v27_v18 = vld [vmem:[%s482_s0 + $0x78] sm:$0xff]  ;;  %s372_s0 = smov [#allocation2]  }
   0xc   :  { %vm227_vm1 = vcmp.eq.s32.totalorder %v226_v20, 32  ;;  %s265_s18 = sshll.u32 %s372_s0, 4  ;;  %s266_s18 = int_to_ptr.vmem [resolvable:$true] %s265_s18 }
   0xd   :  { %321 = vmatmul.mubr.msk.f32.gmra.mxu0 %vm31_vm0, %v15_v9  ;;  %333 = vmatmul.mubr.msk.f32.gmra.mxu1 %vm31_vm0, %v23_v10  ;;  %s350_s19 = scalar_lea.vmem %s266_s18, 2048  ;;  %p355_p1 = scmp.lt.s32.totalorder %s266_s18, %s266_s18 }
   0xe   :  { %323 = vmatprep.mubr.msk.f32.mxu0 %vm31_vm0, %v16_v11  ;;  %335 = vmatprep.mubr.msk.f32.mxu1 %vm31_vm0, %v24_v12  ;;  %p351_p0 = scmp.ne.s32.totalorder %s266_s18, %s350_s19  ;;  %p356_p2 = scmp.lt.s32.totalorder %s350_s19, %s350_s19 }
  0x10   :  { %p357_p3 = por %p356_p2, %p355_p1 }
  0x11   :  { %324 = vmatmul.mubr.msk.f32.gmra.mxu0 %vm31_vm0, %v17_v13  ;;  %336 = vmatmul.mubr.msk.f32.gmra.mxu1 %vm31_vm0, %v25_v14 }
  0x12   :  { %326 = vmatprep.mubr.msk.f32.mxu0 %vm31_vm0, %v18_v15  ;;  %338 = vmatprep.mubr.msk.f32.mxu1 %vm31_vm0, %v26_v16  ;;  %p358_p4 = pnand %p357_p3, %p351_p0 }
  0x15   :  { %327 = vmatmul.mubr.msk.f32.gmra.mxu0 %vm31_vm0, %v19_v17  ;;  %339 = vmatmul.mubr.msk.f32.gmra.mxu1 %vm31_vm0, %v27_v18 }
  0xc9   :  { %v319_v21 = vpop.f32.mrf.mxu0  ;;  %v331_v22 = vpop.f32.mrf.mxu1 }
  0xca   :  { %v229_v23 = vsel %vm227_vm1, 1.0, %v319_v21  ;;  %v237_v24 = vsel %vm227_vm1, 1.0, %v331_v22 }
  0xcb   :  { %245 = vst [vmem:[#allocation2 + $0x8] sm:$0xff] %v229_v23  ;;  %253 = vst [vmem:[#allocation2 + $0x48] sm:$0xff] %v237_v24  ;;  %v146_v25 = vpop.f32.mrf.mxu0  ;;  %v186_v26 = vpop.f32.mrf.mxu1 }
  0xcc   :  { %v228_v27 = vsel %vm227_vm1, 1.0, %v146_v25  ;;  %v236_v28 = vsel %vm227_vm1, 1.0, %v186_v26 }
  0xcd   :  { %244 = vst [vmem:[#allocation2] sm:$0xff] %v228_v27  ;;  %252 = vst [vmem:[#allocation2 + $0x40] sm:$0xff] %v236_v28  ;;  %v322_v29 = vpop.f32.mrf.mxu0  ;;  %v334_v30 = vpop.f32.mrf.mxu1 }
  0xce   :  { %v231_v31 = vsel %vm227_vm1, 1.0, %v322_v29  ;;  %v239_v32 = vsel %vm227_vm1, 1.0, %v334_v30 }
  0xcf   :  { %247 = vst [vmem:[#allocation2 + $0x18] sm:$0xff] %v231_v31  ;;  %255 = vst [vmem:[#allocation2 + $0x58] sm:$0xff] %v239_v32  ;;  %v156_v33 = vpop.f32.mrf.mxu0  ;;  %v196_v34 = vpop.f32.mrf.mxu1 }
  0xd0   :  { %v230_v35 = vsel %vm227_vm1, 1.0, %v156_v33  ;;  %v238_v36 = vsel %vm227_vm1, 1.0, %v196_v34 }
  0xd1   :  { %246 = vst [vmem:[#allocation2 + $0x10] sm:$0xff] %v230_v35  ;;  %254 = vst [vmem:[#allocation2 + $0x50] sm:$0xff] %v238_v36  ;;  %v325_v37 = vpop.f32.mrf.mxu0  ;;  %v337_v38 = vpop.f32.mrf.mxu1 }
  0xd2   :  { %v233_v39 = vsel %vm227_vm1, 1.0, %v325_v37  ;;  %v241_v40 = vsel %vm227_vm1, 1.0, %v337_v38 }
  0xd3   :  { %249 = vst [vmem:[#allocation2 + $0x28] sm:$0xff] %v233_v39  ;;  %257 = vst [vmem:[#allocation2 + $0x68] sm:$0xff] %v241_v40  ;;  %v166_v41 = vpop.f32.mrf.mxu0  ;;  %v206_v42 = vpop.f32.mrf.mxu1 }
  0xd4   :  { %v232_v43 = vsel %vm227_vm1, 1.0, %v166_v41  ;;  %v240_v44 = vsel %vm227_vm1, 1.0, %v206_v42 }
  0xd5   :  { %248 = vst [vmem:[#allocation2 + $0x20] sm:$0xff] %v232_v43  ;;  %256 = vst [vmem:[#allocation2 + $0x60] sm:$0xff] %v240_v44  ;;  %v328_v45 = vpop.f32.mrf.mxu0  ;;  %v340_v46 = vpop.f32.mrf.mxu1 }
  0xd6   :  { %v235_v47 = vsel %vm227_vm1, 1.0, %v328_v45  ;;  %v243_v48 = vsel %vm227_vm1, 1.0, %v340_v46 }
  0xd7   :  { %251 = vst [vmem:[#allocation2 + $0x38] sm:$0xff] %v235_v47  ;;  %259 = vst [vmem:[#allocation2 + $0x78] sm:$0xff] %v243_v48  ;;  %v176_v49 = vpop.f32.mrf.mxu0  ;;  %v216_v50 = vpop.f32.mrf.mxu1 }
  0xd8   :  { %v234_v51 = vsel %vm227_vm1, 1.0, %v176_v49  ;;  %v242_v52 = vsel %vm227_vm1, 1.0, %v216_v50 }
  0xd9   :  { %250 = vst [vmem:[#allocation2 + $0x30] sm:$0xff] %v234_v51  ;;  %258 = vst [vmem:[#allocation2 + $0x70] sm:$0xff] %v242_v52 }
  0xda   :  { %361 = shalt.err (!%p358_p4)
}
  0xdb   :  { %s373_s20 = smov 128   ;;  %s374_s1 = smov 8  }
  0xdc   :  { %271 = dma.vmem_to_hbm [thread:$0]  %s266_s18, 2048, %s484_s2, [#allocation3], %s373_s20, %s373_s20, %s374_s1  }
  0xdd   :  { %370 = dma.done.wait [#allocation3], 2048  }
  0xde   :  { %371 = vsyncadd [#allocation3], 4294965248 }
  0xdf   :  { %275 = vsyncpa [#allocation3], 1 }

</bundles_post_ra>
